<compile_context>
chip_gen: v6e
topology: v6e:2x2x1
jax: 0.10.0
libtpu: 0.0.40
codegen_flags: <defaults>
</compile_context>

<pallas_src>
import jax
import jax.numpy as jnp
from jax.experimental import pallas as pl
from jax.experimental.pallas import tpu as pltpu


def _round_up(n, m):
    return ((n + m - 1) // m) * m


def mlp_kernel(xT_ref, w1_ref, b1_ref, w2_ref, b2_ref, w3_ref, b3_ref, oT_ref):
    # fc1: W1 [64,15] @ xᵀ [15,TB] -> [64,TB]; bias+ReLU in f32.
    h1 = jnp.dot(w1_ref[...], xT_ref[...], preferred_element_type=jnp.float32)
    h1 = jnp.maximum(h1 + b1_ref[...], 0.0)
    # fc2: W2 [32,64] @ h1ᵀ -> [32,TB]
    h2 = jnp.dot(w2_ref[...], h1.astype(w2_ref.dtype),
                 preferred_element_type=jnp.float32)
    h2 = jnp.maximum(h2 + b2_ref[...], 0.0)
    # fc3 (no activation): W3 [4,32] @ h2ᵀ -> [4,TB]; lane-dense store.
    o = jnp.dot(w3_ref[...], h2.astype(w3_ref.dtype),
                preferred_element_type=jnp.float32)
    oT_ref[...] = (o + b3_ref[...]).astype(oT_ref.dtype)


def e2e_network(x, params, *, tb=4096):
    """x: [B, 15] float32 -> [B, 4] float32."""
    w1, b1, w2, b2, w3, b3 = params          # weights [out, in], biases [out, 1]
    B, f_in = x.shape
    f_out = w3.shape[0]

    # bf16 MXU operands; biases stay f32 (added to the f32 accumulator).
    w1_bf = w1.astype(jnp.bfloat16)
    w2_bf = w2.astype(jnp.bfloat16)
    w3_bf = w3.astype(jnp.bfloat16)

    # Batch tile rides the lane axis: multiple of 128. For large B make sure
    # there are >=2 grid steps so v7x's two TensorCores both get work.
    TB = min(tb, _round_up(B, 128))
    if B > 128 and _round_up(B, TB) // TB < 2:
        TB = _round_up(-(-B // 2), 128)
    B_pad = _round_up(B, TB)

    # Transposed, lane-dense input slab [15, B_pad] in bf16.
    xT = x.T.astype(jnp.bfloat16)
    if B_pad != B:
        xT = jnp.pad(xT, ((0, 0), (0, B_pad - B)))

    grid = (B_pad // TB,)
    const = lambda i: (0, 0)  # weights/biases resident across the batch grid

    flops = 2 * B_pad * (15 * 64 + 64 * 32 + 32 * 4)
    weight_bytes = (15 * 64 + 64 * 32 + 32 * 4) * 2 + (64 + 32 + 4) * 4
    bytes_accessed = B_pad * f_in * 2 + B_pad * f_out * 4 + weight_bytes

    outT = pl.pallas_call(
        mlp_kernel,
        out_shape=jax.ShapeDtypeStruct((f_out, B_pad), jnp.float32),
        grid=grid,
        in_specs=[
            pl.BlockSpec((f_in, TB), lambda i: (0, i)),   # xᵀ tile, lane-dense
            pl.BlockSpec(w1_bf.shape, const),
            pl.BlockSpec(b1.shape, const),
            pl.BlockSpec(w2_bf.shape, const),
            pl.BlockSpec(b2.shape, const),
            pl.BlockSpec(w3_bf.shape, const),
            pl.BlockSpec(b3.shape, const),
        ],
        out_specs=pl.BlockSpec((f_out, TB), lambda i: (0, i)),  # lane-dense out
        compiler_params=pltpu.CompilerParams(
            dimension_semantics=("parallel",)),
        cost_estimate=pl.CostEstimate(
            flops=flops, transcendentals=0, bytes_accessed=bytes_accessed),
    )(xT, w1_bf, b1, w2_bf, b2, w3_bf, b3)

    return outT.T[:B]


def init_params(key):
    """Deterministic init matching nn.Linear: 15->64->32->4.
    PyTorch-style uniform(-1/sqrt(fan_in), 1/sqrt(fan_in)).
    Weights stored [out, in] (nn.Linear native), biases stored [out, 1]."""
    dims = [(15, 64), (64, 32), (32, 4)]
    params = []
    for fan_in, fan_out in dims:
        key, kw, kb = jax.random.split(key, 3)
        bound = 1.0 / jnp.sqrt(fan_in)
        w = jax.random.uniform(kw, (fan_out, fan_in), jnp.float32, -bound, bound)
        b = jax.random.uniform(kb, (fan_out, 1), jnp.float32, -bound, bound)
        params.extend([w, b])
    return tuple(params)


def reference(x, params):
    w1, b1, w2, b2, w3, b3 = params
    h1 = jnp.maximum(x @ w1.T + b1.T, 0.0)
    h2 = jnp.maximum(h1 @ w2.T + b2.T, 0.0)
    return h2 @ w3.T + b3.T


if __name__ == "__main__":
    key = jax.random.PRNGKey(0)
    key, kx = jax.random.split(key)
    B = 8
    x = jax.random.normal(kx, (B, 15), jnp.float32)
    params = init_params(key)

    out = jax.block_until_ready(e2e_network(x, params))
    ref = reference(x, params)
    assert out.shape == (B, 4), out.shape
    # Tolerance loosened vs pure-f32 reference because x/weights are bf16.
    assert jnp.allclose(out, ref, atol=5e-2, rtol=5e-2), "mismatch vs reference"

    # Exercise the multi-block + padded-batch path with a small lane tile.
    B2 = 300
    x2 = jax.random.normal(jax.random.PRNGKey(1), (B2, 15), jnp.float32)
    out2 = jax.block_until_ready(e2e_network(x2, params, tb=128))
    ref2 = reference(x2, params)
    assert out2.shape == (B2, 4), out2.shape
    assert jnp.allclose(out2, ref2, atol=5e-2, rtol=5e-2), "mismatch (tiled path)"

    print("KERNEL_OK")
</pallas_src>

<mosaic_0001>
module attributes {stable_mosaic.version = 11 : i64} {
  func.func @mlp_kernel(%arg0: i32, %arg1: memref<15x128xbf16, #tpu.memory_space<vmem>>, %arg2: memref<64x15xbf16, #tpu.memory_space<vmem>>, %arg3: memref<64x1xf32, #tpu.memory_space<vmem>>, %arg4: memref<32x64xbf16, #tpu.memory_space<vmem>>, %arg5: memref<32x1xf32, #tpu.memory_space<vmem>>, %arg6: memref<4x32xbf16, #tpu.memory_space<vmem>>, %arg7: memref<4x1xf32, #tpu.memory_space<vmem>>, %arg8: memref<4x128xf32, #tpu.memory_space<vmem>>) attributes {dimension_semantics = [#tpu.dimension_semantics<parallel>], iteration_bounds = array<i64: 1>, scalar_prefetch = 0 : i64, scratch_operands = 0 : i64, tpu.core_type = #tpu.core_type<tc>, window_params = [{transform_indices = @transform_0, window_bounds = array<i64: 15, 128>}, {pipeline_mode = #tpu.pipeline_mode<synchronous>, transform_indices = @transform_1, window_bounds = array<i64: 64, 15>}, {pipeline_mode = #tpu.pipeline_mode<synchronous>, transform_indices = @transform_2, window_bounds = array<i64: 64, 1>}, {pipeline_mode = #tpu.pipeline_mode<synchronous>, transform_indices = @transform_3, window_bounds = array<i64: 32, 64>}, {pipeline_mode = #tpu.pipeline_mode<synchronous>, transform_indices = @transform_4, window_bounds = array<i64: 32, 1>}, {pipeline_mode = #tpu.pipeline_mode<synchronous>, transform_indices = @transform_5, window_bounds = array<i64: 4, 32>}, {pipeline_mode = #tpu.pipeline_mode<synchronous>, transform_indices = @transform_6, window_bounds = array<i64: 4, 1>}, {transform_indices = @transform_7, window_bounds = array<i64: 4, 128>}]} {
    %c0 = arith.constant 0 : index
    %c0_0 = arith.constant 0 : index
    %0 = vector.load %arg2[%c0, %c0_0] : memref<64x15xbf16, #tpu.memory_space<vmem>>, vector<64x15xbf16>
    %c0_1 = arith.constant 0 : index
    %c0_2 = arith.constant 0 : index
    %1 = vector.load %arg1[%c0_1, %c0_2] : memref<15x128xbf16, #tpu.memory_space<vmem>>, vector<15x128xbf16>
    %cst = arith.constant dense<0.000000e+00> : vector<64x128xf32>
    %2 = tpu.matmul %0, %1, %cst {dimension_numbers = #tpu.dot_dimension_numbers<[1], [0], [0], [1], [0, 0, 1, 1], [], []>} : vector<64x15xbf16>, vector<15x128xbf16>, vector<64x128xf32> -> vector<64x128xf32>
    %c0_3 = arith.constant 0 : index
    %c0_4 = arith.constant 0 : index
    %3 = vector.load %arg3[%c0_3, %c0_4] : memref<64x1xf32, #tpu.memory_space<vmem>>, vector<64x1xf32>
    %4 = vector.broadcast %3 : vector<64x1xf32> to vector<64x128xf32>
    %5 = arith.addf %2, %4 : vector<64x128xf32>
    %cst_5 = arith.constant 0.000000e+00 : f32
    %6 = vector.broadcast %cst_5 : f32 to vector<64x128xf32>
    %7 = arith.maximumf %5, %6 : vector<64x128xf32>
    %c0_6 = arith.constant 0 : index
    %c0_7 = arith.constant 0 : index
    %8 = vector.load %arg4[%c0_6, %c0_7] : memref<32x64xbf16, #tpu.memory_space<vmem>>, vector<32x64xbf16>
    %9 = arith.truncf %7 : vector<64x128xf32> to vector<64x128xbf16>
    %cst_8 = arith.constant dense<0.000000e+00> : vector<32x128xf32>
    %10 = tpu.matmul %8, %9, %cst_8 {dimension_numbers = #tpu.dot_dimension_numbers<[1], [0], [0], [1], [0, 0, 1, 1], [], []>} : vector<32x64xbf16>, vector<64x128xbf16>, vector<32x128xf32> -> vector<32x128xf32>
    %c0_9 = arith.constant 0 : index
    %c0_10 = arith.constant 0 : index
    %11 = vector.load %arg5[%c0_9, %c0_10] : memref<32x1xf32, #tpu.memory_space<vmem>>, vector<32x1xf32>
    %12 = vector.broadcast %11 : vector<32x1xf32> to vector<32x128xf32>
    %13 = arith.addf %10, %12 : vector<32x128xf32>
    %cst_11 = arith.constant 0.000000e+00 : f32
    %14 = vector.broadcast %cst_11 : f32 to vector<32x128xf32>
    %15 = arith.maximumf %13, %14 : vector<32x128xf32>
    %c0_12 = arith.constant 0 : index
    %c0_13 = arith.constant 0 : index
    %16 = vector.load %arg6[%c0_12, %c0_13] : memref<4x32xbf16, #tpu.memory_space<vmem>>, vector<4x32xbf16>
    %17 = arith.truncf %15 : vector<32x128xf32> to vector<32x128xbf16>
    %cst_14 = arith.constant dense<0.000000e+00> : vector<4x128xf32>
    %18 = tpu.matmul %16, %17, %cst_14 {dimension_numbers = #tpu.dot_dimension_numbers<[1], [0], [0], [1], [0, 0, 1, 1], [], []>} : vector<4x32xbf16>, vector<32x128xbf16>, vector<4x128xf32> -> vector<4x128xf32>
    %c0_15 = arith.constant 0 : index
    %c0_16 = arith.constant 0 : index
    %19 = vector.load %arg7[%c0_15, %c0_16] : memref<4x1xf32, #tpu.memory_space<vmem>>, vector<4x1xf32>
    %20 = vector.broadcast %19 : vector<4x1xf32> to vector<4x128xf32>
    %21 = arith.addf %18, %20 : vector<4x128xf32>
    %c0_17 = arith.constant 0 : index
    %c0_18 = arith.constant 0 : index
    %22 = vector.load %arg8[%c0_17, %c0_18] : memref<4x128xf32, #tpu.memory_space<vmem>>, vector<4x128xf32>
    tpu.vector_store %arg8[%c0_17, %c0_18], %21 {strides = array<i32>} : memref<4x128xf32, #tpu.memory_space<vmem>>, vector<4x128xf32>,
    return
  }
  func.func @transform_0(%arg0: i32) -> (i32, i32) {
    %c0_i32 = arith.constant 0 : i32
    %c0_i32_0 = arith.constant 0 : i32
    return %c0_i32, %arg0 : i32, i32
  }
  func.func @transform_1(%arg0: i32) -> (i32, i32) {
    %c0_i32 = arith.constant 0 : i32
    %c0_i32_0 = arith.constant 0 : i32
    %c0_i32_1 = arith.constant 0 : i32
    return %c0_i32, %c0_i32_0 : i32, i32
  }
  func.func @transform_2(%arg0: i32) -> (i32, i32) {
    %c0_i32 = arith.constant 0 : i32
    %c0_i32_0 = arith.constant 0 : i32
    %c0_i32_1 = arith.constant 0 : i32
    return %c0_i32, %c0_i32_0 : i32, i32
  }
  func.func @transform_3(%arg0: i32) -> (i32, i32) {
    %c0_i32 = arith.constant 0 : i32
    %c0_i32_0 = arith.constant 0 : i32
    %c0_i32_1 = arith.constant 0 : i32
    return %c0_i32, %c0_i32_0 : i32, i32
  }
  func.func @transform_4(%arg0: i32) -> (i32, i32) {
    %c0_i32 = arith.constant 0 : i32
    %c0_i32_0 = arith.constant 0 : i32
    %c0_i32_1 = arith.constant 0 : i32
    return %c0_i32, %c0_i32_0 : i32, i32
  }
  func.func @transform_5(%arg0: i32) -> (i32, i32) {
    %c0_i32 = arith.constant 0 : i32
    %c0_i32_0 = arith.constant 0 : i32
    %c0_i32_1 = arith.constant 0 : i32
    return %c0_i32, %c0_i32_0 : i32, i32
  }
  func.func @transform_6(%arg0: i32) -> (i32, i32) {
    %c0_i32 = arith.constant 0 : i32
    %c0_i32_0 = arith.constant 0 : i32
    %c0_i32_1 = arith.constant 0 : i32
    return %c0_i32, %c0_i32_0 : i32, i32
  }
  func.func @transform_7(%arg0: i32) -> (i32, i32) {
    %c0_i32 = arith.constant 0 : i32
    %c0_i32_0 = arith.constant 0 : i32
    return %c0_i32, %arg0 : i32, i32
  }
}

</mosaic_0001>

<bundles_post_ra>
// kernel: tpu_custom_call.1
= control target key start
LH: loop header
LB: loop body
LE: loop exit
PB: predicated region body
PF: predicated region fallthrough
CT: control target
= control target key end

     0   :  { %vm124_vm0 = vcmask 1046528   ;;  %vm125_vm1 = vcmask 1047552   ;;  %v468_v1 = vmov 65535   ;;  %vm111_vm2 = vcmask 121856   ;;  %s585_s0 = inlined_call_operand.vmem [shape: bf16[15,128], index: 0, kind: input, shape index: {}]   ;;  %s586_s1 = inlined_call_operand.vmem [shape: bf16[64,15], index: 1, kind: input, shape index: {}]   ;;  %s587_s2 = inlined_call_operand.vmem [shape: f32[64,1], index: 2, kind: input, shape index: {}]   ;;  %s588_s3 = inlined_call_operand.vmem [shape: bf16[32,64], index: 3, kind: input, shape index: {}]   ;;  %s589_s4 = inlined_call_operand.vmem [shape: f32[32,1], index: 4, kind: input, shape index: {}]   ;;  %s590_s5 = inlined_call_operand.vmem [shape: bf16[4,32], index: 5, kind: input, shape index: {}]   ;;  %s591_s6 = inlined_call_operand.vmem [shape: f32[4,1], index: 6, kind: input, shape index: {}]   ;;  %s592_s7 = inlined_call_operand.hbm [shape: f32[4,128], index: 7, kind: output, shape index: {}]  }
   0x1   :  { %v439_v0 = vld [vmem:[%s585_s0] sm:$0xff]   ;;  %v126_v2 = vsel %vm124_vm0, 4294967295, %v468_v1  ;;  %v44_v6 = vld [vmem:[%s587_s2 + $0x30] sm:$0xff]  ;;  %v441_v7 = vld [vmem:[%s586_s1 + $0x8] sm:$0xff]   ;;  %v469_v8 = vmov 0  }
   0x2   :  { %v440_v3 = vld [vmem:[%s586_s1] sm:$0xff]   ;;  %v127_v4 = vsel %vm125_vm1, %v126_v2, 0  ;;  %437 = vset.pattern.permute.xlu0 %v469_v8  ;;  %v442_v10 = vld [vmem:[%s586_s1 + $0x10] sm:$0xff]   ;;  %v45_v11 = vld [vmem:[%s587_s2 + $0x38] sm:$0xff]  ;;  %438 = vset.pattern.permute.xlu1 %v469_v8 }
   0x3   :  { %v129_v5 = vand.u32 %v439_v0, %v127_v4  ;;  %404 = vmatprep.mubr.msk.bf16.mxu0 %vm111_vm2, %v440_v3  ;;  %v42_v9 = vld [vmem:[%s587_s2 + $0x20] sm:$0xff]  ;;  %78 = vperm.xlu0 %437, %v44_v6   ;;  %v43_v12 = vld [vmem:[%s587_s2 + $0x28] sm:$0xff] }
   0x4   :  { %68 = vperm.xlu1 %438, %v42_v9  }
   0x5   :  { %402 = vmatprep.subr.bf16.mxu0 %v129_v5 }
   0x6   :  { %403 = vmatpush3.bf16.msra.mxu0 %v129_v5 }
   0x7   :  { %83 = vperm.xlu0 %437, %v45_v11  }
   0x9   :  { %405 = vmatmul.mubr.msk.bf16.vlgmr.msra.gmra.mxu0 %vm111_vm2, %v441_v7 }
   0xa   :  { %408 = vmatprep.mubr.msk.bf16.mxu0 %vm111_vm2, %v442_v10 }
   0xb   :  { %12 = vsyncpa [#allocation3], 0  ;;  %v40_v13 = vld [vmem:[%s587_s2 + $0x10] sm:$0xff]  ;;  %73 = vperm.xlu1 %438, %v43_v12   ;;  %v443_v14 = vld [vmem:[%s586_s1 + $0x18] sm:$0xff]   ;;  %vm246_vm3 = vcmask 523264   ;;  %v470_v61 = vmov 0.0  }
   0xc   :  { %v41_v15 = vld [vmem:[%s587_s2 + $0x18] sm:$0xff]  ;;  %58 = vperm.xlu0 %437, %v40_v13   ;;  %v38_v16 = vld [vmem:[%s587_s2] sm:$0xff]  ;;  %v39_v17 = vld [vmem:[%s587_s2 + $0x8] sm:$0xff]  ;;  %424 = vmatprep.subr.bf16.mxu0 %v470_v61  ;;  %vm471_vm4 = vmmov 0   ;;  %vm315_vm5 = vcmask 261120   ;;  %s472_s13 = smov [#allocation2]  }
   0xd   :  { %v214_v18 = vld [vmem:[%s589_s4 + $0x10] sm:$0xff]  ;;  %v215_v19 = vld [vmem:[%s589_s4 + $0x18] sm:$0xff]  ;;  %v212_v20 = vld [vmem:[%s589_s4] sm:$0xff]  ;;  %s366_s14 = sshll.u32 %s472_s13, 4  ;;  %s367_s14 = int_to_ptr.vmem [resolvable:$true] %s366_s14 }
   0xe   :  { %v213_v21 = vld [vmem:[%s589_s4 + $0x8] sm:$0xff]  ;;  %v309_v22 = vld [vmem:[%s591_s6] sm:$0xf]  ;;  %s446_s15 = scalar_lea.vmem %s367_s14, 64  ;;  %p451_p1 = scmp.lt.s32.totalorder %s367_s14, %s367_s14 }
   0xf   :  { %63 = vperm.xlu1 %438, %v41_v15   ;;  %v444_v23 = vld [vmem:[%s588_s3] sm:$0xff]   ;;  %v445_v60 = vld [vmem:[%s588_s3 + $0x8] sm:$0xff]   ;;  %p447_p0 = scmp.ne.s32.totalorder %s367_s14, %s446_s15  ;;  %p452_p2 = scmp.lt.s32.totalorder %s446_s15, %s446_s15 }
  0x10   :  { %48 = vperm.xlu0 %437, %v38_v16   ;;  %420 = vmatprep.mubr.msk.bf16.mxu1 %vm246_vm3, %v444_v23  ;;  %v306_v16 = vld [vmem:[%s590_s5] sm:$0x3] }
  0x11   :  { %409 = vmatmul.mubr.msk.bf16.gmra.mxu0 %vm111_vm2, %v443_v14  ;;  %p453_p3 = por %p452_p2, %p451_p1 }
  0x12   :  { %428 = vmatprep.mubr.msk.bf16.mxu0 %vm471_vm4, %v470_v61 }
  0x13   :  { %53 = vperm.xlu1 %438, %v39_v17   ;;  %p454_p4 = pnand %p453_p3, %p447_p0 }
  0x14   :  { %228 = vperm.xlu0 %437, %v214_v18  }
  0x17   :  { %233 = vperm.xlu1 %438, %v215_v19  }
  0x18   :  { %218 = vperm.xlu0 %437, %v212_v20  }
  0x1b   :  { %223 = vperm.xlu1 %438, %v213_v21  }
  0x1c   :  { %312 = vperm.xlu0 %437, %v309_v22  }
  0x7e   :  { %v79_v26 = vpop.permute.xlu0 %78 }
  0x7f   :  { %v69_v24 = vpop.permute.xlu1 %68 }
  0x82   :  { %v84_v31 = vpop.permute.xlu0 %83 }
  0x86   :  { %v74_v29 = vpop.permute.xlu1 %73 }
  0x87   :  { %v59_v39 = vpop.permute.xlu0 %58 }
  0x8a   :  { %v64_v35 = vpop.permute.xlu1 %63 }
  0x8b   :  { %v49_v53 = vpop.permute.xlu0 %48 }
  0x8e   :  { %v54_v49 = vpop.permute.xlu1 %53 }
  0x8f   :  { %v229_v62 = vpop.permute.xlu0 %228 }
  0x92   :  { %v234_v63 = vpop.permute.xlu1 %233 }
  0x93   :  { %v219_v4 = vpop.permute.xlu0 %218 }
  0x96   :  { %v224_v6 = vpop.permute.xlu1 %223 }
  0x97   :  { %v313_v17 = vpop.permute.xlu0 %312 }
  0xc9   :  { %v406_v25 = vpop.f32.mrf.mxu0 }
  0xca   :  { %v174_v45 = vadd.f32 %v406_v25, %v59_v39 }
  0xcb   :  { %v165_v27 = vpop.f32.mrf.mxu0 }
  0xcc   :  { %v198_v54 = vmax.f32 %v174_v45, 0.0  ;;  %v166_v55 = vadd.f32 %v165_v27, %v49_v53 }
  0xcd   :  { %v407_v28 = vpop.f32.mrf.mxu0 }
  0xce   :  { %v177_v41 = vadd.f32 %v407_v28, %v64_v35  ;;  %v196_v58 = vmax.f32 %v166_v55, 0.0 }
  0xcf   :  { %v168_v30 = vpop.f32.mrf.mxu0 }
  0xd0   :  { %v199_v50 = vmax.f32 %v177_v41, 0.0  ;;  %v169_v51 = vadd.f32 %v168_v30, %v54_v49 }
  0xd1   :  { %v410_v32 = vpop.f32.mrf.mxu0 }
  0xd2   :  { %v190_v34 = vadd.f32 %v410_v32, %v79_v26  ;;  %v209_v56 = vpack.c.bf16 %v199_v50, %v198_v54  ;;  %v197_v57 = vmax.f32 %v169_v51, 0.0 }
  0xd3   :  { %v181_v33 = vpop.f32.mrf.mxu0 }
  0xd4   :  { %v182_v37 = vadd.f32 %v181_v33, %v69_v24  ;;  %v202_v42 = vmax.f32 %v190_v34, 0.0  ;;  %v208_v59 = vpack.c.bf16 %v197_v57, %v196_v58 }
  0xd5   :  { %v411_v36 = vpop.f32.mrf.mxu0 }
  0xd6   :  { %v193_v38 = vadd.f32 %v411_v36, %v84_v31  ;;  %v200_v46 = vmax.f32 %v182_v37, 0.0 }
  0xd7   :  { %v184_v40 = vpop.f32.mrf.mxu0 }
  0xd8   :  { %v203_v43 = vmax.f32 %v193_v38, 0.0  ;;  %v185_v44 = vadd.f32 %v184_v40, %v74_v29 }
  0xda   :  { %v201_v47 = vmax.f32 %v185_v44, 0.0  ;;  %v211_v48 = vpack.c.bf16 %v203_v43, %v202_v42 }
  0xdc   :  { %v210_v52 = vpack.c.bf16 %v201_v47, %v200_v46  ;;  %412 = vmatprep.subr.bf16.mxu1 %v211_v48 }
  0xdd   :  { %413 = vmatpush3.bf16.msra.mxu1 %v211_v48 }
  0xde   :  { %414 = vmatprep.subr.bf16.mxu1 %v210_v52 }
  0xe1   :  { %415 = vmatpush3.bf16.msra.mxu1 %v210_v52 }
  0xe2   :  { %416 = vmatprep.subr.bf16.mxu1 %v209_v56 }
  0xe5   :  { %417 = vmatpush3.bf16.msra.mxu1 %v209_v56 }
  0xe6   :  { %418 = vmatprep.subr.bf16.mxu1 %v208_v59 }
  0xe9   :  { %419 = vmatpush3.bf16.msra.mxu1 %v208_v59 }
  0xec   :  { %421 = vmatmul.mubr.msk.bf16.vlgmr.msra.gmra.mxu1 %vm246_vm3, %v445_v60 }
 0x1ac   :  { %v422_v0 = vpop.f32.mrf.mxu1 }
 0x1ad   :  { %v296_v2 = vadd.f32 %v422_v0, %v229_v62 }
 0x1ae   :  { %v287_v1 = vpop.f32.mrf.mxu1 }
 0x1af   :  { %v304_v8 = vmax.f32 %v296_v2, 0.0  ;;  %v288_v9 = vadd.f32 %v287_v1, %v219_v4 }
 0x1b0   :  { %v423_v3 = vpop.f32.mrf.mxu1 }
 0x1b1   :  { %v299_v5 = vadd.f32 %v423_v3, %v234_v63  ;;  %v302_v14 = vmax.f32 %v288_v9, 0.0 }
 0x1b2   :  { %v290_v7 = vpop.f32.mrf.mxu1 }
 0x1b3   :  { %v305_v10 = vmax.f32 %v299_v5, 0.0  ;;  %v291_v11 = vadd.f32 %v290_v7, %v224_v6 }
 0x1b5   :  { %v308_v12 = vpack.c.bf16 %v305_v10, %v304_v8  ;;  %v303_v13 = vmax.f32 %v291_v11, 0.0 }
 0x1b7   :  { %425 = vmatpush3.bf16.msra.mxu0 %v308_v12  ;;  %v307_v15 = vpack.c.bf16 %v303_v13, %v302_v14 }
 0x1b8   :  { %426 = vmatprep.subr.bf16.mxu0 %v470_v61 }
 0x1bb   :  { %427 = vmatpush3.bf16.msra.mxu0 %v307_v15 }
 0x1be   :  { %429 = vmatmul.mubr.msk.bf16.vlgmr.msra.gmra.mxu0 %vm315_vm5, %v306_v16 }
 0x27e   :  { %v353_v18 = vpop.f32.mrf.mxu0 }
 0x27f   :  { %v354_v19 = vadd.f32 %v353_v18, %v313_v17 }
 0x280   :  { %v430_v20 = vpop.f32.mrf.mxu0 }
 0x281   :  { %359 = vst [vmem:[#allocation2] sm:$0xf] %v354_v19 }
 0x282   :  { %v356_v21 = vpop.f32.mrf.mxu0 }
 0x283   :  { %457 = shalt.err (!%p454_p4)
}
 0x284   :  { %369 = dma.vmem_to_hbm [thread:$0]  %s367_s14, 64, %s592_s7, [#allocation3]   ;;  %v431_v22 = vpop.f32.mrf.mxu0 }
 0x285   :  { %466 = dma.done.wait [#allocation3], 64  }
 0x286   :  { %467 = vsyncadd [#allocation3], 4294967232 }
 0x287   :  { %373 = vsyncpa [#allocation3], 1 }

</bundles_post_ra>
